<compile_context>
chip_gen: v7x
topology: tpu7x:2x2x1
jax: 0.10.0
libtpu: 0.0.40
codegen_flags: <defaults>
</compile_context>

<pallas_src>
import jax
import jax.numpy as jnp
from jax.experimental import pallas as pl
from jax.experimental.pallas import tpu as pltpu


# ---------------------------------------------------------------------------
# Pallas kernel factory: fused conv(kxk) + folded-BN + optional residual /
# fused 1x1-conv+BN downsample + optional ReLU.  All FLOPs live here.
# ---------------------------------------------------------------------------
def _make_conv_bn_kernel(ksize, stride, th, wo, cin, relu, res_mode):
    n_planes = stride * stride

    def kernel(*refs):
        x_refs = refs[:n_planes]
        w_ref = refs[n_planes]            # scale-folded weights (K, Cout), resident
        shift_ref = refs[n_planes + 1]    # folded BN shift (1, Cout), resident
        extra = refs[n_planes + 2:-1]     # residual tile OR downsample-input tile
        out_ref = refs[-1]

        # k*k taps = unit-stride offset windows of the resident input tile(s);
        # the conv stride is already absorbed by the parity-plane decomposition.
        taps = []
        for ky in range(ksize):
            for kx in range(ksize):
                p = (ky % stride) * stride + (kx % stride)
                oy, ox = ky // stride, kx // stride
                t = x_refs[p][0, oy:oy + th, ox:ox + wo, :]        # (th, wo, cin)
                taps.append(t.reshape(th * wo, cin))
        if res_mode == 'down':
            # stride-sampled original input = extra taps of the same matmul
            taps.append(extra[0][0])                               # (th*wo, cind)
        lhs = taps[0] if len(taps) == 1 else jnp.concatenate(taps, axis=-1)

        # single big-K MXU matmul (conv + fused downsample), f32 accumulation
        y = jnp.dot(lhs, w_ref[...], preferred_element_type=jnp.float32)
        y = y + shift_ref[...]                                     # folded BN shift(s)

        if res_mode == 'add':                                      # identity residual
            y = y + extra[0][0]
        if relu:
            y = jnp.maximum(y, 0.0)
        out_ref[0] = y.astype(out_ref.dtype)

    return kernel


def _largest_divisor_le(n, target):
    t = max(1, min(n, target))
    while n % t:
        t -= 1
    return t


def conv_bn_act(x, w, shift, *, ksize, stride, pad, relu,
                residual=None, down=None, row_tile=128,
                vmem_limit_bytes=32 * 1024 * 1024):
    """conv(kxk, stride, pad, no bias) -> BN(eval, scale folded into w) ->
       [+identity | +fused 1x1-conv+BN downsample (weights stacked into w)] -> [ReLU].

    x: (N,H,W,Cin) f32; w: (k*k*Cin [+Cin_down], Cout) scale-folded weights
    (compute dtype); shift: (1,Cout) f32 folded BN shift (sum of both branches
    when downsample is fused); residual: (N,Ho,Wo,Cout) or None;
    down: dict(x, stride) or None.
    """
    compute_dtype = w.dtype
    n, h, w_, cin = x.shape
    cout = w.shape[1]
    ho = (h + 2 * pad - ksize) // stride + 1
    wo = (w_ + 2 * pad - ksize) // stride + 1
    th = _largest_divisor_le(ho, row_tile)       # output rows per grid step
    nt = ho // th
    ntiles = n * nt
    hal = (ksize - 1) // stride                  # halo rows/cols (plane units)
    hin, win = th + hal, wo + hal                # per-tile plane extent

    # --- glue: padding / parity planes / halo row-tiles (slicing only, ~1x) --
    xp = jnp.pad(x, ((0, 0), (pad, pad), (pad, pad), (0, 0))).astype(compute_dtype)
    hneed = ho + hal
    row_idx = (jnp.arange(nt) * th)[:, None] + jnp.arange(hin)[None, :]
    planes = []
    for a in range(stride):
        for b in range(stride):
            pln = jax.lax.slice(
                xp, (0, a, b, 0),
                (n, a + stride * (hneed - 1) + 1, b + stride * (win - 1) + 1, cin),
                (1, stride, stride, 1))                          # (N, hneed, win, cin)
            pln = pln[:, row_idx]                                # (N, nt, hin, win, cin)
            planes.append(pln.reshape(ntiles, hin, win, cin))
    n_planes = stride * stride

    args = list(planes) + [w, shift]
    in_specs = (
        [pl.BlockSpec((1, hin, win, cin), lambda g: (g, 0, 0, 0))] * n_planes
        + [pl.BlockSpec(w.shape, lambda g: (0, 0)),              # resident weights
           pl.BlockSpec((1, cout), lambda g: (0, 0))])           # resident BN shift

    res_mode = None
    if residual is not None:
        res_mode = 'add'
        args.append(residual.reshape(ntiles, th * wo, cout).astype(jnp.float32))
        in_specs.append(pl.BlockSpec((1, th * wo, cout), lambda g: (g, 0, 0)))
    elif down is not None:
        res_mode = 'down'
        ds = down['stride']
        dxs = down['x'][:, ::ds, ::ds, :][:, :ho, :wo, :]        # 1x1 stride-s sampling
        cind = dxs.shape[-1]
        assert w.shape[0] == ksize * ksize * cin + cind
        args.append(dxs.reshape(ntiles, th * wo, cind).astype(compute_dtype))
        in_specs.append(pl.BlockSpec((1, th * wo, cind), lambda g: (g, 0, 0)))
    else:
        assert w.shape[0] == ksize * ksize * cin

    out = pl.pallas_call(
        _make_conv_bn_kernel(ksize, stride, th, wo, cin, relu, res_mode),
        grid=(ntiles,),
        out_shape=jax.ShapeDtypeStruct((ntiles, th * wo, cout), jnp.float32),
        in_specs=in_specs,
        out_specs=pl.BlockSpec((1, th * wo, cout), lambda g: (g, 0, 0)),
        compiler_params=pltpu.CompilerParams(
            dimension_semantics=("parallel",),
            vmem_limit_bytes=vmem_limit_bytes),
    )(*args)
    return out.reshape(n, ho, wo, cout)


# ---------------------------------------------------------------------------
# Parameter construction (mirrors the PyTorch __init__) + one-time folding
# ---------------------------------------------------------------------------
def _kaiming_out(key, shape):
    cout, _, kh, kw = shape
    std = (2.0 / (cout * kh * kw)) ** 0.5
    return std * jax.random.normal(key, shape, jnp.float32)


def _bn_params(c):
    return dict(gamma=jnp.ones((c,), jnp.float32), beta=jnp.zeros((c,), jnp.float32),
                mean=jnp.zeros((c,), jnp.float32), var=jnp.ones((c,), jnp.float32))


def init_basic_block(key, inplanes, planes, stride):
    k1, k2, k3 = jax.random.split(key, 3)
    p = dict(stride=stride,
             conv1_w=_kaiming_out(k1, (planes, inplanes, 3, 3)), bn1=_bn_params(planes),
             conv2_w=_kaiming_out(k2, (planes, planes, 3, 3)), bn2=_bn_params(planes))
    if stride != 1 or inplanes != planes:        # BasicBlock.expansion == 1
        p['down_w'] = _kaiming_out(k3, (planes, inplanes, 1, 1))
        p['down_bn'] = _bn_params(planes)
    return p


def init_resnet_modified(key, layers, layer_strides, num_filters, inplanes):
    params = []
    for nblocks, stride, planes in zip(layers, layer_strides, num_filters):
        key, sub = jax.random.split(key)
        bkeys = jax.random.split(sub, nblocks)
        blocks = [init_basic_block(bkeys[0], inplanes, planes, stride)]
        inplanes = planes
        for b in range(1, nblocks):
            blocks.append(init_basic_block(bkeys[b], inplanes, planes, 1))
        params.append(blocks)
    return params


def _fold_bn(bn, eps=1e-5):
    inv = 1.0 / jnp.sqrt(bn['var'] + eps)
    scale = (bn['gamma'] * inv).astype(jnp.float32)                      # (C,)
    shift = (bn['beta'] - bn['mean'] * bn['gamma'] * inv).reshape(1, -1).astype(jnp.float32)
    return scale, shift


def _fold_w(w_oihw, scale, compute_dtype):
    """OIHW -> (kh*kw*Cin, Cout) with the BN scale folded into the weights."""
    cout, cin, kh, kw = w_oihw.shape
    w = jnp.transpose(w_oihw, (2, 3, 1, 0)).reshape(kh * kw * cin, cout)
    return (w * scale[None, :]).astype(compute_dtype)


def fold_block_params(p, compute_dtype=jnp.float32):
    """One-time conversion to kernel layout (off the per-forward critical path)."""
    s1, b1 = _fold_bn(p['bn1'])
    s2, b2 = _fold_bn(p['bn2'])
    fp = dict(stride=p['stride'],
              w1=_fold_w(p['conv1_w'], s1, compute_dtype), b1=b1)
    w2 = _fold_w(p['conv2_w'], s2, compute_dtype)
    if 'down_w' in p:
        sd, bd = _fold_bn(p['down_bn'])
        wd = _fold_w(p['down_w'], sd, compute_dtype)
        fp['w2'] = jnp.concatenate([w2, wd], axis=0)   # conv2 + downsample in one matmul
        fp['b2'] = b2 + bd
        fp['has_down'] = True
    else:
        fp['w2'] = w2
        fp['b2'] = b2
        fp['has_down'] = False
    return fp


def fold_resnet_params(params, compute_dtype=jnp.float32):
    return [[fold_block_params(p, compute_dtype) for p in blocks] for blocks in params]


# ---------------------------------------------------------------------------
# Forward (Pallas-backed): 2 fused pallas_calls per BasicBlock
# ---------------------------------------------------------------------------
def basic_block_forward(fp, x, *, row_tile=128):
    out = conv_bn_act(x, fp['w1'], fp['b1'], ksize=3, stride=fp['stride'],
                      pad=1, relu=True, row_tile=row_tile)
    if fp['has_down']:   # downsample branch fused into conv2's single matmul
        out = conv_bn_act(out, fp['w2'], fp['b2'], ksize=3, stride=1, pad=1,
                          relu=True, row_tile=row_tile,
                          down=dict(x=x, stride=fp['stride']))
    else:
        out = conv_bn_act(out, fp['w2'], fp['b2'], ksize=3, stride=1, pad=1,
                          relu=True, row_tile=row_tile, residual=x)
    return out


def resnet_modified_forward(folded_params, x_nchw, return_interm=True, row_tile=128):
    x = jnp.transpose(x_nchw, (0, 2, 3, 1))               # NCHW -> NHWC
    interm = []
    for blocks in folded_params:
        for fp in blocks:
            x = basic_block_forward(fp, x, row_tile=row_tile)
        interm.append(jnp.transpose(x, (0, 3, 1, 2)))     # NHWC -> NCHW
    if return_interm:
        return interm
    return interm[-1]


# ---------------------------------------------------------------------------
# Pure-JAX reference (correctness check only)
# ---------------------------------------------------------------------------
def _ref_conv(x, w, stride, pad):
    return jax.lax.conv_general_dilated(
        x, w, (stride, stride), [(pad, pad), (pad, pad)],
        dimension_numbers=('NCHW', 'OIHW', 'NCHW'))


def _ref_bn(x, bn, eps=1e-5):
    g = bn['gamma'].reshape(1, -1, 1, 1); b = bn['beta'].reshape(1, -1, 1, 1)
    m = bn['mean'].reshape(1, -1, 1, 1); v = bn['var'].reshape(1, -1, 1, 1)
    return (x - m) / jnp.sqrt(v + eps) * g + b


def _ref_block(p, x):
    out = jax.nn.relu(_ref_bn(_ref_conv(x, p['conv1_w'], p['stride'], 1), p['bn1']))
    identity = x
    if 'down_w' in p:
        identity = _ref_bn(_ref_conv(x, p['down_w'], p['stride'], 0), p['down_bn'])
    out = _ref_bn(_ref_conv(out, p['conv2_w'], 1, 1), p['bn2']) + identity
    return jax.nn.relu(out)


def _ref_forward(params, x):
    interm = []
    for blocks in params:
        for p in blocks:
            x = _ref_block(p, x)
        interm.append(x)
    return interm


if __name__ == "__main__":
    key = jax.random.PRNGKey(0)
    kx, kp = jax.random.split(key)

    # Small config consistent with the module: BasicBlock, 2 stages.
    N, C, H, W = 2, 4, 16, 16
    layers = [2, 2]
    layer_strides = [1, 2]
    num_filters = [4, 8]

    x = jax.random.normal(kx, (N, C, H, W), jnp.float32)
    params = init_resnet_modified(kp, layers, layer_strides, num_filters, inplanes=C)
    refs = _ref_forward(params, x)
    expected_shapes = [(N, 4, 16, 16), (N, 8, 8, 8)]

    # f32 MXU path, small row tiles (exercises the multi-tile grid + halo path).
    fp_f32 = fold_resnet_params(params, jnp.float32)
    feats = jax.block_until_ready(resnet_modified_forward(fp_f32, x, row_tile=8))
    for f, r, es in zip(feats, refs, expected_shapes):
        assert f.shape == es, (f.shape, es)
        assert jnp.allclose(f, r, atol=1e-4, rtol=1e-4), float(jnp.max(jnp.abs(f - r)))

    # bf16 MXU operands (v6e/v7x fast path): f32 accumulation + f32 epilogue.
    fp_bf16 = fold_resnet_params(params, jnp.bfloat16)
    feats_bf = jax.block_until_ready(resnet_modified_forward(fp_bf16, x, row_tile=128))
    for f, r, es in zip(feats_bf, refs, expected_shapes):
        assert f.shape == es, (f.shape, es)
        assert jnp.allclose(f, r, atol=1e-1, rtol=1e-1), float(jnp.max(jnp.abs(f - r)))

    print("KERNEL_OK")
</pallas_src>

<mosaic_0001>
module attributes {stable_mosaic.version = 11 : i64} {
  func.func @kernel(%arg0: i32, %arg1: memref<1x10x18x4xf32, #tpu.memory_space<vmem>>, %arg2: memref<36x4xf32, #tpu.memory_space<vmem>>, %arg3: memref<1x4xf32, #tpu.memory_space<vmem>>, %arg4: memref<1x128x4xf32, #tpu.memory_space<vmem>>) attributes {dimension_semantics = [#tpu.dimension_semantics<parallel>], iteration_bounds = array<i64: 4>, scalar_prefetch = 0 : i64, scratch_operands = 0 : i64, tpu.core_type = #tpu.core_type<tc>, window_params = [{transform_indices = @transform_0, window_bounds = array<i64: 1, 10, 18, 4>}, {pipeline_mode = #tpu.pipeline_mode<synchronous>, transform_indices = @transform_1, window_bounds = array<i64: 36, 4>}, {pipeline_mode = #tpu.pipeline_mode<synchronous>, transform_indices = @transform_2, window_bounds = array<i64: 1, 4>}, {transform_indices = @transform_3, window_bounds = array<i64: 1, 128, 4>}]} {
    %c0 = arith.constant 0 : index
    %c0_0 = arith.constant 0 : index
    %c0_1 = arith.constant 0 : index
    %c0_2 = arith.constant 0 : index
    %0 = vector.load %arg1[%c0, %c0_0, %c0_1, %c0_2] : memref<1x10x18x4xf32, #tpu.memory_space<vmem>>, vector<1x8x16x4xf32>
    %1 = vector.shape_cast %0 : vector<1x8x16x4xf32> to vector<8x16x4xf32>
    %2 = vector.shape_cast %1 : vector<8x16x4xf32> to vector<128x4xf32>
    %c0_3 = arith.constant 0 : index
    %c0_4 = arith.constant 0 : index
    %c1 = arith.constant 1 : index
    %c0_5 = arith.constant 0 : index
    %3 = vector.load %arg1[%c0_3, %c0_4, %c1, %c0_5] : memref<1x10x18x4xf32, #tpu.memory_space<vmem>>, vector<1x8x16x4xf32>
    %4 = vector.shape_cast %3 : vector<1x8x16x4xf32> to vector<8x16x4xf32>
    %5 = vector.shape_cast %4 : vector<8x16x4xf32> to vector<128x4xf32>
    %c0_6 = arith.constant 0 : index
    %c0_7 = arith.constant 0 : index
    %c2 = arith.constant 2 : index
    %c0_8 = arith.constant 0 : index
    %6 = vector.load %arg1[%c0_6, %c0_7, %c2, %c0_8] : memref<1x10x18x4xf32, #tpu.memory_space<vmem>>, vector<1x8x16x4xf32>
    %7 = vector.shape_cast %6 : vector<1x8x16x4xf32> to vector<8x16x4xf32>
    %8 = vector.shape_cast %7 : vector<8x16x4xf32> to vector<128x4xf32>
    %c0_9 = arith.constant 0 : index
    %c1_10 = arith.constant 1 : index
    %c0_11 = arith.constant 0 : index
    %c0_12 = arith.constant 0 : index
    %9 = vector.load %arg1[%c0_9, %c1_10, %c0_11, %c0_12] : memref<1x10x18x4xf32, #tpu.memory_space<vmem>>, vector<1x8x16x4xf32>
    %10 = vector.shape_cast %9 : vector<1x8x16x4xf32> to vector<8x16x4xf32>
    %11 = vector.shape_cast %10 : vector<8x16x4xf32> to vector<128x4xf32>
    %c0_13 = arith.constant 0 : index
    %c1_14 = arith.constant 1 : index
    %c1_15 = arith.constant 1 : index
    %c0_16 = arith.constant 0 : index
    %12 = vector.load %arg1[%c0_13, %c1_14, %c1_15, %c0_16] : memref<1x10x18x4xf32, #tpu.memory_space<vmem>>, vector<1x8x16x4xf32>
    %13 = vector.shape_cast %12 : vector<1x8x16x4xf32> to vector<8x16x4xf32>
    %14 = vector.shape_cast %13 : vector<8x16x4xf32> to vector<128x4xf32>
    %c0_17 = arith.constant 0 : index
    %c1_18 = arith.constant 1 : index
    %c2_19 = arith.constant 2 : index
    %c0_20 = arith.constant 0 : index
    %15 = vector.load %arg1[%c0_17, %c1_18, %c2_19, %c0_20] : memref<1x10x18x4xf32, #tpu.memory_space<vmem>>, vector<1x8x16x4xf32>
    %16 = vector.shape_cast %15 : vector<1x8x16x4xf32> to vector<8x16x4xf32>
    %17 = vector.shape_cast %16 : vector<8x16x4xf32> to vector<128x4xf32>
    %c0_21 = arith.constant 0 : index
    %c2_22 = arith.constant 2 : index
    %c0_23 = arith.constant 0 : index
    %c0_24 = arith.constant 0 : index
    %18 = vector.load %arg1[%c0_21, %c2_22, %c0_23, %c0_24] : memref<1x10x18x4xf32, #tpu.memory_space<vmem>>, vector<1x8x16x4xf32>
    %19 = vector.shape_cast %18 : vector<1x8x16x4xf32> to vector<8x16x4xf32>
    %20 = vector.shape_cast %19 : vector<8x16x4xf32> to vector<128x4xf32>
    %c0_25 = arith.constant 0 : index
    %c2_26 = arith.constant 2 : index
    %c1_27 = arith.constant 1 : index
    %c0_28 = arith.constant 0 : index
    %21 = vector.load %arg1[%c0_25, %c2_26, %c1_27, %c0_28] : memref<1x10x18x4xf32, #tpu.memory_space<vmem>>, vector<1x8x16x4xf32>
    %22 = vector.shape_cast %21 : vector<1x8x16x4xf32> to vector<8x16x4xf32>
    %23 = vector.shape_cast %22 : vector<8x16x4xf32> to vector<128x4xf32>
    %c0_29 = arith.constant 0 : index
    %c2_30 = arith.constant 2 : index
    %c2_31 = arith.constant 2 : index
    %c0_32 = arith.constant 0 : index
    %24 = vector.load %arg1[%c0_29, %c2_30, %c2_31, %c0_32] : memref<1x10x18x4xf32, #tpu.memory_space<vmem>>, vector<1x8x16x4xf32>
    %25 = vector.shape_cast %24 : vector<1x8x16x4xf32> to vector<8x16x4xf32>
    %26 = vector.shape_cast %25 : vector<8x16x4xf32> to vector<128x4xf32>
    %27 = tpu.concatenate %2, %5, %8, %11, %14, %17, %20, %23, %26 in 1 : vector<128x4xf32>, vector<128x4xf32>, vector<128x4xf32>, vector<128x4xf32>, vector<128x4xf32>, vector<128x4xf32>, vector<128x4xf32>, vector<128x4xf32>, vector<128x4xf32> -> vector<128x36xf32>
    %c0_33 = arith.constant 0 : index
    %c0_34 = arith.constant 0 : index
    %28 = vector.load %arg2[%c0_33, %c0_34] : memref<36x4xf32, #tpu.memory_space<vmem>>, vector<36x4xf32>
    %cst = arith.constant dense<0.000000e+00> : vector<128x4xf32>
    %29 = tpu.matmul %27, %28, %cst {dimension_numbers = #tpu.dot_dimension_numbers<[1], [0], [0], [1], [0, 0, 1, 1], [], []>} : vector<128x36xf32>, vector<36x4xf32>, vector<128x4xf32> -> vector<128x4xf32>
    %c0_35 = arith.constant 0 : index
    %c0_36 = arith.constant 0 : index
    %30 = vector.load %arg3[%c0_35, %c0_36] : memref<1x4xf32, #tpu.memory_space<vmem>>, vector<1x4xf32>
    %31 = vector.broadcast %30 : vector<1x4xf32> to vector<128x4xf32>
    %32 = arith.addf %29, %31 : vector<128x4xf32>
    %cst_37 = arith.constant 0.000000e+00 : f32
    %33 = vector.broadcast %cst_37 : f32 to vector<128x4xf32>
    %34 = arith.maximumf %32, %33 : vector<128x4xf32>
    %c0_38 = arith.constant 0 : index
    %c0_39 = arith.constant 0 : index
    %c0_40 = arith.constant 0 : index
    %35 = vector.load %arg4[%c0_38, %c0_39, %c0_40] : memref<1x128x4xf32, #tpu.memory_space<vmem>>, vector<1x128x4xf32>
    %36 = vector.shape_cast %35 : vector<1x128x4xf32> to vector<128x4xf32>
    %37 = vector.shape_cast %34 : vector<128x4xf32> to vector<1x128x4xf32>
    tpu.vector_store %arg4[%c0_38, %c0_39, %c0_40], %37 {strides = array<i32>} : memref<1x128x4xf32, #tpu.memory_space<vmem>>, vector<1x128x4xf32>,
    return
  }
  func.func @transform_0(%arg0: i32) -> (i32, i32, i32, i32) {
    %c0_i32 = arith.constant 0 : i32
    %c0_i32_0 = arith.constant 0 : i32
    %c0_i32_1 = arith.constant 0 : i32
    %c0_i32_2 = arith.constant 0 : i32
    return %arg0, %c0_i32, %c0_i32_0, %c0_i32_1 : i32, i32, i32, i32
  }
  func.func @transform_1(%arg0: i32) -> (i32, i32) {
    %c0_i32 = arith.constant 0 : i32
    %c0_i32_0 = arith.constant 0 : i32
    %c0_i32_1 = arith.constant 0 : i32
    return %c0_i32, %c0_i32_0 : i32, i32
  }
  func.func @transform_2(%arg0: i32) -> (i32, i32) {
    %c0_i32 = arith.constant 0 : i32
    %c0_i32_0 = arith.constant 0 : i32
    %c0_i32_1 = arith.constant 0 : i32
    return %c0_i32, %c0_i32_0 : i32, i32
  }
  func.func @transform_3(%arg0: i32) -> (i32, i32, i32) {
    %c0_i32 = arith.constant 0 : i32
    %c0_i32_0 = arith.constant 0 : i32
    %c0_i32_1 = arith.constant 0 : i32
    return %arg0, %c0_i32, %c0_i32_0 : i32, i32, i32
  }
}

</mosaic_0001>

<bundles_post_ra>
// kernel: tpu_custom_call.1
= control target key start
LH: loop header
LB: loop body
LE: loop exit
PB: predicated region body
PF: predicated region fallthrough
CT: control target
= control target key end

     0   :  { %s1509_s12 = smov 0   ;;  %s2140_s0 = inlined_call_operand.vmem [shape: f32[4,10,18,4], index: 0, kind: input, shape index: {}]   ;;  %s2141_s1 = inlined_call_operand.vmem [shape: f32[36,4], index: 1, kind: input, shape index: {}]   ;;  %s2142_s2 = inlined_call_operand.vmem [shape: f32[1,4], index: 2, kind: input, shape index: {}]   ;;  %s2143_s3 = inlined_call_operand.vmem [shape: f32[4,128,4], index: 3, kind: output, shape index: {}]  }
   0x1 LB: > { %s1262_s13 = sadd.s32 4294967295, %s1479_s12   ;;  %p1266_p0 = scmp.ge.s32.totalorder %s1479_s12, 1  ;;  %s1479_s12 = sphi %s1509_s12, %s13_s12  }
   0x2   : > { %p137_p1 = scmp.lt.s32.totalorder %s1479_s12, 5 }
   0x4   : > { %p138_p2 = pnand %p1266_p0, %p137_p1 }
   0x6   : > { %141 = sbr.rel (%p138_p2) target bundleno = 606 (0x25e), region = 32 }
   0xd   : > { %p161_p3 = scmp.lt.s32.totalorder %s1262_s13, 3  ;;  %s1481_s18 = smov 4   ;;  %v965_v26 = vld [vmem:[%s2141_s1] sm:$0xff]  ;;  %v966_v27 = vld [vmem:[%s2141_s1 + $0x8] sm:$0xff]  ;;  %v967_v31 = vld [vmem:[%s2141_s1 + $0x10] sm:$0xff]  ;;  %vm1026_vm0 = vcmask 1043456  }
   0xe   : > { %s1482_s19 = smov 8   ;;  %s1483_s20 = smov 12   ;;  %v1442_v30 = vpack.c.bf16 %v966_v27, %v965_v26  ;;  %v968_v32 = vld [vmem:[%s2141_s1 + $0x18] sm:$0xff]  ;;  %v969_v36 = vld [vmem:[%s2141_s1 + $0x20] sm:$0xf]  ;;  %vm829_vm1 = vcmask 31744  }
   0xf   : > { %s2160_s13 = smov (!%p161_p3, %s1262_s13), 3  ;;  %s1484_s21 = smov 16   ;;  %v1446_v35 = vpack.c.bf16 %v968_v32, %v967_v31  ;;  %vm846_vm2 = vcmask 64512   ;;  %vm863_vm3 = vcmask 97280   ;;  %vm880_vm4 = vcmask 130048  }
  0x10   : > { %s1456_s14 = smul.u32 240, %s2160_s13  ;;  %s1485_s22 = smov 20   ;;  %1443 = vmatprep.subr.bf16.mxu0 %v1442_v30  ;;  %1450 = vmatprep.subr.bf16.mxu1 %v1442_v30  ;;  %vm897_vm5 = vcmask 162816   ;;  %vm914_vm6 = vcmask 195584   ;;  %vm931_vm7 = vcmask 228352   ;;  %vm948_vm8 = vcmask 261120  }
  0x11   : > { %s1486_s23 = smov 24   ;;  %s1487_s24 = smov 28   ;;  %1445 = vmatpush3.bf16.msra.mxu0 %v1442_v30  ;;  %1453 = vmatpush3.bf16.msra.mxu1 %v1442_v30  ;;  %vm977_vm9 = vcmask 293888  }
  0x12   : > { %s1523_s17 = scalar_lea.vmem %s2140_s0, %s1456_s14  ;;  %1447 = vmatprep.subr.bf16.mxu0 %v1446_v35  ;;  %1451 = vmatprep.subr.bf16.mxu1 %v1446_v35  ;;  %s1488_s6 = smov 32  }
  0x13   : > { %v188_v0 = vld [vmem:[%s1523_s17 + $0x9] sm:$0xff]  ;;  %v187_v1 = vld [vmem:[%s1523_s17 + $0x1] sm:$0xff]  ;;  %v1554_v8 = vld [vmem:[%s1523_s17 + $0x78] sm:$0xff]  ;;  %s1386_s11 = sshll.u32 %s2160_s13, 7 }
  0x14   : > { %335 = vrot.lane.b32.xlu1 %v188_v0, %s1481_s18  ;;  %333 = vrot.lane.b32.xlu0 %v187_v1, %s1481_s18  ;;  %v1530_v2 = vld [vmem:[%s1523_s17 + $0x69] sm:$0xff]  ;;  %v1533_v3 = vld [vmem:[%s1523_s17 + $0x61] sm:$0xff]  ;;  %s2103_s16 = scalar_lea.vmem %s2143_s3, %s1386_s11 }
  0x15   : > { %v1540_v4 = vld [vmem:[%s1523_s17 + $0x62] sm:$0xff]  ;;  %v1547_v6 = vld [vmem:[%s1523_s17 + $0x6a] sm:$0xff]  ;;  %v1557_v9 = vld [vmem:[%s1523_s17 + $0x18] sm:$0xff]  ;;  %1449 = vmatpush3.bf16.msra.mxu0 %v1446_v35  ;;  %1454 = vmatpush3.bf16.msra.mxu1 %v1446_v35 }
  0x16   : > { %v203_v5 = vld [vmem:[%s1523_s17 + $0x2] sm:$0xff]  ;;  %v204_v7 = vld [vmem:[%s1523_s17 + $0xa] sm:$0xff]  ;;  %v1574_v12 = vld [vmem:[%s1523_s17 + $0x79] sm:$0xff]  ;;  %1416 = vmatprep.subr.msk.mxu0 %vm1026_vm0, %v969_v36  ;;  %1452 = vmatprep.subr.msk.mxu1 %vm1026_vm0, %v969_v36 }
  0x17   : > { %v1564_v10 = vld [vmem:[%s1523_s17 + $0x80] sm:$0xff]  ;;  %v1611_v20 = vld [vmem:[%s1523_s17 + $0x90] sm:$0xff]  ;;  %v1628_v22 = vld [vmem:[%s1523_s17 + $0x98] sm:$0xff] }
  0x18   : > { %351 = vrot.lane.b32.xlu1 %v1530_v2, %s1481_s18  ;;  %349 = vrot.lane.b32.xlu0 %v1533_v3, %s1481_s18  ;;  %v1567_v11 = vld [vmem:[%s1523_s17 + $0x20] sm:$0xff]  ;;  %v1614_v21 = vld [vmem:[%s1523_s17 + $0x30] sm:$0xff] }
  0x19   : > { %v1286_v13 = vld [vmem:[%s1523_s17 + $0x19] sm:$0xff]  ;;  %v1584_v14 = vld [vmem:[%s1523_s17 + $0x81] sm:$0xff]  ;;  %v1342_v24 = vld [vmem:[%s1523_s17 + $0x91] sm:$0xff]  ;;  %1417 = vmatpush3.msk.msra.mxu0 %vm1026_vm0, %v969_v36  ;;  %1455 = vmatpush3.msk.msra.mxu1 %vm1026_vm0, %v969_v36 }
  0x1a   : > { %v1287_v15 = vld [vmem:[%s1523_s17 + $0x21] sm:$0xff]  ;;  %v1631_v23 = vld [vmem:[%s1523_s17 + $0x38] sm:$0xff]  ;;  %v1715_v47 = vld [vmem:[%s1523_s17 + $0xb0] sm:$0xff] }
  0x1b   : > { %v1591_v16 = vld [vmem:[%s1523_s17 + $0x7a] sm:$0xff]  ;;  %v1604_v18 = vld [vmem:[%s1523_s17 + $0x82] sm:$0xff]  ;;  %v1334_v25 = vld [vmem:[%s1523_s17 + $0x31] sm:$0xff]  ;;  %2152 = vst [vmem:[#allocation5_spill] sm:$0xff] %v1715_v47 }
  0x1c   : > { %413 = vrot.lane.b32.xlu1 %v1540_v4, %s1482_s19  ;;  %397 = vrot.lane.b32.xlu0 %v203_v5, %s1482_s19  ;;  %v1302_v17 = vld [vmem:[%s1523_s17 + $0x1a] sm:$0xff]  ;;  %2149 = vst [vmem:[#allocation2_spill] sm:$0xff] %v1604_v18  ;;  %v1303_v19 = vld [vmem:[%s1523_s17 + $0x22] sm:$0xff] }
  0x1d   : > { %v1343_v28 = vld [vmem:[%s1523_s17 + $0x99] sm:$0xff]  ;;  %v1687_v39 = vld [vmem:[%s1523_s17 + $0xa8] sm:$0xff]  ;;  %v1718_v48 = vld [vmem:[%s1523_s17 + $0x50] sm:$0xff] }
  0x1e   : > { %v1335_v29 = vld [vmem:[%s1523_s17 + $0x39] sm:$0xff]  ;;  %2150 = vst [vmem:[#allocation3_spill] sm:$0xff] %v1687_v39  ;;  %v1690_v40 = vld [vmem:[%s1523_s17 + $0x48] sm:$0xff]  ;;  %2153 = vst [vmem:[#allocation6_spill] sm:$0xff] %v1718_v48 }
  0x1f   : > { %v1358_v33 = vld [vmem:[%s1523_s17 + $0x92] sm:$0xff]  ;;  %v1359_v37 = vld [vmem:[%s1523_s17 + $0x9a] sm:$0xff]  ;;  %2151 = vst [vmem:[#allocation4_spill] sm:$0xff] %v1690_v40  ;;  %v1344_v51 = vld [vmem:[%s1523_s17 + $0xa9] sm:$0xff] }
  0x20   : > { %415 = vrot.lane.b32.xlu1 %v1547_v6, %s1482_s19  ;;  %399 = vrot.lane.b32.xlu0 %v204_v7, %s1482_s19  ;;  %v1350_v34 = vld [vmem:[%s1523_s17 + $0x32] sm:$0xff]  ;;  %v1351_v38 = vld [vmem:[%s1523_s17 + $0x3a] sm:$0xff] }
  0x21   : > { %v1336_v52 = vld [vmem:[%s1523_s17 + $0x49] sm:$0xff]  ;;  %v1345_v59 = vld [vmem:[%s1523_s17 + $0xb1] sm:$0xff]  ;;  %v1330_v35 = vld [vmem:[%s1523_s17 + $0xc0] sm:$0xff] }
  0x22   : > { %v1337_v60 = vld [vmem:[%s1523_s17 + $0x51] sm:$0xff] }
  0x23   : > { %v1360_v63 = vld [vmem:[%s1523_s17 + $0xaa] sm:$0xff]  ;;  %v1353_v26 = vld [vmem:[%s1523_s17 + $0x52] sm:$0xff] }
  0x24   : > { %477 = vrot.lane.b32.xlu1 %v1554_v8, %s1483_s20  ;;  %461 = vrot.lane.b32.xlu0 %v1557_v9, %s1483_s20  ;;  %v1352_v0 = vld [vmem:[%s1523_s17 + $0x4a] sm:$0xff] }
  0x28   : > { %479 = vrot.lane.b32.xlu1 %v1564_v10, %s1483_s20  ;;  %463 = vrot.lane.b32.xlu0 %v1567_v11, %s1483_s20 }
  0x2c   : > { %541 = vrot.lane.b32.xlu1 %v1574_v12, %s1484_s21  ;;  %525 = vrot.lane.b32.xlu0 %v1286_v13, %s1484_s21 }
  0x30   : > { %353 = vrot.lane.b32.xlu1 %v1574_v12, %s1481_s18  ;;  %337 = vrot.lane.b32.xlu0 %v1286_v13, %s1481_s18 }
  0x34   : > { %543 = vrot.lane.b32.xlu1 %v1584_v14, %s1484_s21  ;;  %527 = vrot.lane.b32.xlu0 %v1287_v15, %s1484_s21 }
  0x38   : > { %605 = vrot.lane.b32.xlu1 %v1591_v16, %s1485_s22  ;;  %589 = vrot.lane.b32.xlu0 %v1302_v17, %s1485_s22 }
  0x3c   : > { %355 = vrot.lane.b32.xlu1 %v1584_v14, %s1481_s18  ;;  %339 = vrot.lane.b32.xlu0 %v1287_v15, %s1481_s18 }
  0x40   : > { %417 = vrot.lane.b32.xlu1 %v1591_v16, %s1482_s19  ;;  %401 = vrot.lane.b32.xlu0 %v1302_v17, %s1482_s19 }
  0x44   : > { %607 = vrot.lane.b32.xlu1 %v1604_v18, %s1485_s22  ;;  %591 = vrot.lane.b32.xlu0 %v1303_v19, %s1485_s22 }
  0x48   : > { %669 = vrot.lane.b32.xlu1 %v1611_v20, %s1486_s23  ;;  %653 = vrot.lane.b32.xlu0 %v1614_v21, %s1486_s23 }
  0x4c   : > { %419 = vrot.lane.b32.xlu1 %v1604_v18, %s1482_s19  ;;  %403 = vrot.lane.b32.xlu0 %v1303_v19, %s1482_s19 }
  0x50   : > { %481 = vrot.lane.b32.xlu1 %v1611_v20, %s1483_s20  ;;  %465 = vrot.lane.b32.xlu0 %v1614_v21, %s1483_s20 }
  0x54   : > { %671 = vrot.lane.b32.xlu1 %v1628_v22, %s1486_s23  ;;  %655 = vrot.lane.b32.xlu0 %v1631_v23, %s1486_s23 }
  0x58   : > { %733 = vrot.lane.b32.xlu1 %v1342_v24, %s1487_s24  ;;  %717 = vrot.lane.b32.xlu0 %v1334_v25, %s1487_s24 }
  0x5c   : > { %483 = vrot.lane.b32.xlu1 %v1628_v22, %s1483_s20  ;;  %467 = vrot.lane.b32.xlu0 %v1631_v23, %s1483_s20 }
  0x60   : > { %545 = vrot.lane.b32.xlu1 %v1342_v24, %s1484_s21  ;;  %529 = vrot.lane.b32.xlu0 %v1334_v25, %s1484_s21 }
  0x64   : > { %735 = vrot.lane.b32.xlu1 %v1343_v28, %s1487_s24  ;;  %719 = vrot.lane.b32.xlu0 %v1335_v29, %s1487_s24 }
  0x68   : > { %797 = vrot.lane.b32.xlu1 %v1358_v33, %s1488_s6  ;;  %781 = vrot.lane.b32.xlu0 %v1350_v34, %s1488_s6 }
  0x6c   : > { %357 = vrot.lane.b32.xlu1 %v1342_v24, %s1481_s18  ;;  %341 = vrot.lane.b32.xlu0 %v1334_v25, %s1481_s18  ;;  %v1361_v25 = vld [vmem:[%s1523_s17 + $0xb2] sm:$0xff] }
  0x70   : > { %547 = vrot.lane.b32.xlu1 %v1343_v28, %s1484_s21  ;;  %531 = vrot.lane.b32.xlu0 %v1335_v29, %s1484_s21 }
  0x74   : > { %609 = vrot.lane.b32.xlu1 %v1358_v33, %s1485_s22  ;;  %593 = vrot.lane.b32.xlu0 %v1350_v34, %s1485_s22 }
  0x78   : > { %799 = vrot.lane.b32.xlu1 %v1359_v37, %s1488_s6  ;;  %783 = vrot.lane.b32.xlu0 %v1351_v38, %s1488_s6 }
  0x7c   : > { %359 = vrot.lane.b32.xlu1 %v1343_v28, %s1481_s18  ;;  %343 = vrot.lane.b32.xlu0 %v1335_v29, %s1481_s18 }
  0x80   : > { %421 = vrot.lane.b32.xlu1 %v1358_v33, %s1482_s19  ;;  %405 = vrot.lane.b32.xlu0 %v1350_v34, %s1482_s19 }
  0x84   : > { %611 = vrot.lane.b32.xlu1 %v1359_v37, %s1485_s22  ;;  %595 = vrot.lane.b32.xlu0 %v1351_v38, %s1485_s22 }
  0x86   : > { %v1692_v41 = vpop.permute.xlu1 %335  ;;  %v1694_v42 = vpop.permute.xlu0 %333 }
  0x88   : > { %673 = vrot.lane.b32.xlu1 %v1687_v39, %s1486_s23  ;;  %657 = vrot.lane.b32.xlu0 %v1690_v40, %s1486_s23 }
  0x8a   : > { %v1700_v43 = vpop.permute.xlu1 %351  ;;  %v1702_v44 = vpop.permute.xlu0 %349 }
  0x8c   : > { %423 = vrot.lane.b32.xlu1 %v1359_v37, %s1482_s19  ;;  %407 = vrot.lane.b32.xlu0 %v1351_v38, %s1482_s19  ;;  %v179_v38 = vld [vmem:[%s1523_s17 + $0x60] sm:$0xff] }
  0x8e   : > { %v1706_v45 = vpop.permute.xlu1 %413  ;;  %v1708_v46 = vpop.permute.xlu0 %397 }
  0x90   : > { %485 = vrot.lane.b32.xlu1 %v1687_v39, %s1483_s20  ;;  %469 = vrot.lane.b32.xlu0 %v1690_v40, %s1483_s20 }
  0x92   : > { %v1720_v49 = vpop.permute.xlu1 %415  ;;  %v1722_v50 = vpop.permute.xlu0 %399 }
  0x94   : > { %675 = vrot.lane.b32.xlu1 %v1715_v47, %s1486_s23  ;;  %659 = vrot.lane.b32.xlu0 %v1718_v48, %s1486_s23 }
  0x96   : > { %v1730_v53 = vpop.permute.xlu1 %477  ;;  %v1732_v54 = vpop.permute.xlu0 %461 }
  0x98   : > { %737 = vrot.lane.b32.xlu1 %v1344_v51, %s1487_s24  ;;  %721 = vrot.lane.b32.xlu0 %v1336_v52, %s1487_s24 }
  0x9a   : > { %v1736_v55 = vpop.permute.xlu1 %479  ;;  %v1738_v56 = vpop.permute.xlu0 %463 }
  0x9c   : > { %487 = vrot.lane.b32.xlu1 %v1715_v47, %s1483_s20  ;;  %471 = vrot.lane.b32.xlu0 %v1718_v48, %s1483_s20  ;;  %v1331_v47 = vld [vmem:[%s1523_s17 + $0xc8] sm:$0xff] }
  0x9e   : > { %v1744_v57 = vpop.permute.xlu1 %541  ;;  %v1746_v58 = vpop.permute.xlu0 %525 }
  0xa0   : > { %549 = vrot.lane.b32.xlu1 %v1344_v51, %s1484_s21  ;;  %533 = vrot.lane.b32.xlu0 %v1336_v52, %s1484_s21 }
  0xa2   : > { %v354_v61 = vpop.permute.xlu1 %353  ;;  %v338_v62 = vpop.permute.xlu0 %337 }
  0xa4   : > { %739 = vrot.lane.b32.xlu1 %v1345_v59, %s1487_s24  ;;  %723 = vrot.lane.b32.xlu0 %v1337_v60, %s1487_s24 }
  0xa6   : > { %v1756_v1 = vpop.permute.xlu1 %543  ;;  %v1758_v5 = vpop.permute.xlu0 %527 }
  0xa8   : > { %801 = vrot.lane.b32.xlu1 %v1360_v63, %s1488_s6  ;;  %785 = vrot.lane.b32.xlu0 %v1352_v0, %s1488_s6 }
  0xaa   : > { %v1762_v7 = vpop.permute.xlu1 %605  ;;  %v1764_v13 = vpop.permute.xlu0 %589 }
  0xac   : > { %361 = vrot.lane.b32.xlu1 %v1344_v51, %s1481_s18  ;;  %345 = vrot.lane.b32.xlu0 %v1336_v52, %s1481_s18 }
  0xae   : > { %v1768_v15 = vpop.permute.xlu1 %355  ;;  %v1770_v17 = vpop.permute.xlu0 %339 }
  0xb0   : > { %551 = vrot.lane.b32.xlu1 %v1345_v59, %s1484_s21  ;;  %535 = vrot.lane.b32.xlu0 %v1337_v60, %s1484_s21 }
  0xb2   : > { %v418_v19 = vpop.permute.xlu1 %417  ;;  %v402_v24 = vpop.permute.xlu0 %401 }
  0xb4   : > { %613 = vrot.lane.b32.xlu1 %v1360_v63, %s1485_s22  ;;  %597 = vrot.lane.b32.xlu0 %v1352_v0, %s1485_s22 }
  0xb6   : > { %v1778_v27 = vpop.permute.xlu1 %607  ;;  %v1780_v28 = vpop.permute.xlu0 %591 }
  0xb8   : > { %803 = vrot.lane.b32.xlu1 %v1361_v25, %s1488_s6  ;;  %787 = vrot.lane.b32.xlu0 %v1353_v26, %s1488_s6 }
  0xba   : > { %v1784_v29 = vpop.permute.xlu1 %669  ;;  %v1786_v30 = vpop.permute.xlu0 %653 }
  0xbc   : > { %363 = vrot.lane.b32.xlu1 %v1345_v59, %s1481_s18  ;;  %347 = vrot.lane.b32.xlu0 %v1337_v60, %s1481_s18 }
  0xbe   : > { %v1790_v31 = vpop.permute.xlu1 %419  ;;  %v1792_v32 = vpop.permute.xlu0 %403 }
  0xc0   : > { %425 = vrot.lane.b32.xlu1 %v1360_v63, %s1482_s19  ;;  %409 = vrot.lane.b32.xlu0 %v1352_v0, %s1482_s19  ;;  %v840_v63 = vsel %vm829_vm1, %v1554_v8, %v354_v61  ;;  %v832_v0 = vsel %vm829_vm1, %v1557_v9, %v338_v62  ;;  %v180_v9 = vld [vmem:[%s1523_s17 + $0x68] sm:$0xff] }
  0xc1   : > { %v849_v48 = vsel %vm846_vm2, %v832_v0, %v402_v24  ;;  %v838_v24 = vsel %vm829_vm1, %v179_v38, %v1702_v44 }
  0xc2   : > { %v482_v33 = vpop.permute.xlu1 %481  ;;  %v466_v34 = vpop.permute.xlu0 %465 }
  0xc3   : > { %v866_v61 = vsel %vm863_vm3, %v849_v48, %v466_v34  ;;  %v855_v48 = vsel %vm846_vm2, %v838_v24, %v1706_v45 }
  0xc4   : > { %615 = vrot.lane.b32.xlu1 %v1361_v25, %s1485_s22  ;;  %599 = vrot.lane.b32.xlu0 %v1353_v26, %s1485_s22 }
  0xc6   : > { %v1799_v36 = vpop.permute.xlu1 %671  ;;  %v1801_v37 = vpop.permute.xlu0 %655 }
  0xc8   : > { %677 = vrot.lane.b32.xlu1 %v1330_v35, %s1486_s23  ;;  %661 = vrot.lane.b32.xlu0 %v179_v38, %s1486_s23 }
  0xca   : > { %v734_v51 = vpop.permute.xlu1 %733  ;;  %v718_v52 = vpop.permute.xlu0 %717 }
  0xcc   : > { %427 = vrot.lane.b32.xlu1 %v1361_v25, %s1482_s19  ;;  %411 = vrot.lane.b32.xlu0 %v1353_v26, %s1482_s19  ;;  %v171_v25 = vld [vmem:[%s1523_s17] sm:$0xff]  ;;  %v857_v26 = vsel %vm846_vm2, %v840_v63, %v418_v19 }
  0xcd   : > { %v874_v40 = vsel %vm863_vm3, %v857_v26, %v482_v33  ;;  %v830_v19 = vsel %vm829_vm1, %v171_v25, %v1694_v42 }
  0xce   : > { %v1808_v59 = vpop.permute.xlu1 %483  ;;  %v1810_v60 = vpop.permute.xlu0 %467 }
  0xd0   : > { %489 = vrot.lane.b32.xlu1 %v1330_v35, %s1483_s20  ;;  %473 = vrot.lane.b32.xlu0 %v179_v38, %s1483_s20 }
  0xd2   : > { %v546_v39 = vpop.permute.xlu1 %545  ;;  %v530_v18 = vpop.permute.xlu0 %529 }
  0xd3   : > { %v1826_v62 = vsel %vm880_vm4, %v874_v40, %v546_v39  ;;  %v1829_v35 = vsel %vm880_vm4, %v866_v61, %v530_v18  ;;  %v847_v39 = vsel %vm846_vm2, %v830_v19, %v1708_v46  ;;  %v1346_v40 = vld [vmem:[%s1523_s17 + $0xc1] sm:$0xff]  ;;  %v872_v18 = vsel %vm863_vm3, %v855_v48, %v1730_v53  ;;  %v1347_v61 = vld [vmem:[%s1523_s17 + $0xc9] sm:$0xff] }
  0xd4   : > { %679 = vrot.lane.b32.xlu1 %v1331_v47, %s1486_s23  ;;  %663 = vrot.lane.b32.xlu0 %v180_v9, %s1486_s23  ;;  %v864_v42 = vsel %vm863_vm3, %v847_v39, %v1732_v54  ;;  %v889_v34 = vsel %vm880_vm4, %v872_v18, %v1744_v57  ;;  %v1362_v48 = vld [vmem:[%s1523_s17 + $0xc2] sm:$0xff] }
  0xd5   : > { %v881_v45 = vsel %vm880_vm4, %v864_v42, %v1746_v58  ;;  %v906_v46 = vsel %vm897_vm5, %v889_v34, %v1762_v7 }
  0xd6   : > { %v736_v44 = vpop.permute.xlu1 %735  ;;  %v720_v33 = vpop.permute.xlu0 %719  ;;  %v898_v38 = vsel %vm897_vm5, %v881_v45, %v1764_v13  ;;  %v923_v53 = vsel %vm914_vm6, %v906_v46, %v1784_v29 }
  0xd7   : > { %v915_v54 = vsel %vm914_vm6, %v898_v38, %v1786_v30  ;;  %v940_v57 = vsel %vm931_vm7, %v923_v53, %v734_v51  ;;  %v841_v51 = vsel %vm829_vm1, %v1564_v10, %v1768_v15 }
  0xd8   : > { %741 = vrot.lane.b32.xlu1 %v1346_v40, %s1487_s24  ;;  %725 = vrot.lane.b32.xlu0 %v1533_v3, %s1487_s24  ;;  %v932_v58 = vsel %vm931_vm7, %v915_v54, %v718_v52  ;;  %v833_v52 = vsel %vm829_vm1, %v1567_v11, %v1770_v17  ;;  %v858_v25 = vsel %vm846_vm2, %v841_v51, %v1790_v31 }
  0xd9   : > { %v850_v26 = vsel %vm846_vm2, %v833_v52, %v1792_v32  ;;  %v875_v15 = vsel %vm863_vm3, %v858_v25, %v1808_v59  ;;  %v839_v32 = vsel %vm829_vm1, %v180_v9, %v1700_v43  ;;  %v1349_v52 = vld [vmem:[%s1523_s17 + $0xe1] sm:$0xff] }
  0xda   : > { %v798_v7 = vpop.permute.xlu1 %797  ;;  %v782_v63 = vpop.permute.xlu0 %781  ;;  %v867_v11 = vsel %vm863_vm3, %v850_v26, %v1810_v60  ;;  %v856_v59 = vsel %vm846_vm2, %v839_v32, %v1720_v49 }
  0xdb   : > { %v949_v13 = vsel %vm948_vm8, %v932_v58, %v782_v63  ;;  %v957_v0 = vsel %vm948_vm8, %v940_v57, %v798_v7  ;;  %v873_v39 = vsel %vm863_vm3, %v856_v59, %v1736_v55  ;;  %v1333_v58 = vld [vmem:[%s1523_s17 + $0xe0] sm:$0xff] }
  0xdc   : > { %491 = vrot.lane.b32.xlu1 %v1331_v47, %s1483_s20  ;;  %475 = vrot.lane.b32.xlu0 %v180_v9, %s1483_s20  ;;  %v172_v47 = vld [vmem:[%s1523_s17 + $0x8] sm:$0xff]  ;;  %v890_v9 = vsel %vm880_vm4, %v873_v39, %v1756_v1 }
  0xdd   : > { %1418 = vmatprep.mubr.msk.f32.mxu0 %vm977_vm9, %v949_v13  ;;  %1430 = vmatprep.mubr.msk.f32.mxu1 %vm977_vm9, %v957_v0  ;;  %v831_v31 = vsel %vm829_vm1, %v172_v47, %v1692_v41 }
  0xde   : > { %v358_v29 = vpop.permute.xlu1 %357  ;;  %v342_v30 = vpop.permute.xlu0 %341  ;;  %v848_v60 = vsel %vm846_vm2, %v831_v31, %v1722_v50  ;;  %v907_v50 = vsel %vm897_vm5, %v890_v9, %v1778_v27  ;;  %v2154_v31 = vld [vmem:[#allocation2_spill] sm:$0xff] }
  0xdf   : > { %v865_v41 = vsel %vm863_vm3, %v848_v60, %v1738_v56  ;;  %v924_v55 = vsel %vm914_vm6, %v907_v50, %v1799_v36  ;;  %v834_v45 = vsel %vm829_vm1, %v1614_v21, %v342_v30 }
  0xe0   : > { %553 = vrot.lane.b32.xlu1 %v1346_v40, %s1484_s21  ;;  %537 = vrot.lane.b32.xlu0 %v1533_v3, %s1484_s21  ;;  %v882_v49 = vsel %vm880_vm4, %v865_v41, %v1758_v5  ;;  %v941_v1 = vsel %vm931_vm7, %v924_v55, %v736_v44  ;;  %v1363_v44 = vld [vmem:[%s1523_s17 + $0xca] sm:$0xff] }
  0xe1   : > { %v899_v18 = vsel %vm897_vm5, %v882_v49, %v1780_v28 }
  0xe2   : > { %v548_v17 = vpop.permute.xlu1 %547  ;;  %v532_v19 = vpop.permute.xlu0 %531  ;;  %v916_v56 = vsel %vm914_vm6, %v899_v18, %v1801_v37 }
  0xe3   : > { %v1889_v24 = vsel %vm880_vm4, %v875_v15, %v548_v17  ;;  %v1892_v3 = vsel %vm880_vm4, %v867_v11, %v532_v19  ;;  %v933_v5 = vsel %vm931_vm7, %v916_v56, %v720_v33  ;;  %v842_v33 = vsel %vm829_vm1, %v1611_v20, %v358_v29  ;;  %v1332_v20 = vld [vmem:[%s1523_s17 + $0xd8] sm:$0xff]  ;;  %v1365_v15 = vld [vmem:[%s1523_s17 + $0xe2] sm:$0xff] }
  0xe4   : > { %743 = vrot.lane.b32.xlu1 %v1347_v61, %s1487_s24  ;;  %727 = vrot.lane.b32.xlu0 %v1530_v2, %s1487_s24 }
  0xe6   : > { %v1910_v40 = vpop.permute.xlu1 %609  ;;  %v1912_v43 = vpop.permute.xlu0 %593 }
  0xe7   : > { %v908_v39 = vsel %vm897_vm5, %v1826_v62, %v1910_v40  ;;  %v900_v41 = vsel %vm897_vm5, %v1829_v35, %v1912_v43 }
  0xe8   : > { %805 = vrot.lane.b32.xlu1 %v1362_v48, %s1488_s6  ;;  %789 = vrot.lane.b32.xlu0 %v1540_v4, %s1488_s6 }
  0xea   : > { %v800_v27 = vpop.permute.xlu1 %799  ;;  %v784_v42 = vpop.permute.xlu0 %783 }
  0xeb   : > { %v958_v28 = vsel %vm948_vm8, %v941_v1, %v800_v27  ;;  %v950_v34 = vsel %vm948_vm8, %v933_v5, %v784_v42 }
  0xec   : > { %555 = vrot.lane.b32.xlu1 %v1347_v61, %s1484_s21  ;;  %539 = vrot.lane.b32.xlu0 %v1530_v2, %s1484_s21 }
  0xed   : > { %1419 = vmatmul.mubr.msk.f32.vlgmr.msra.gmra.mrb[0].mxu0 %vm977_vm9, %v950_v34  ;;  %1431 = vmatmul.mubr.msk.f32.vlgmr.msra.gmra.mrb[0].mxu1 %vm977_vm9, %v958_v28 }
  0xee   : > { %v360_v36 = vpop.permute.xlu1 %359  ;;  %v344_v37 = vpop.permute.xlu0 %343 }
  0xef   : > { %v843_v7 = vsel %vm829_vm1, %v1628_v22, %v360_v36  ;;  %v835_v63 = vsel %vm829_vm1, %v1631_v23, %v344_v37 }
  0xf0   : > { %617 = vrot.lane.b32.xlu1 %v1362_v48, %s1485_s22  ;;  %601 = vrot.lane.b32.xlu0 %v1540_v4, %s1485_s22 }
  0xf2   : > { %v422_v2 = vpop.permute.xlu1 %421  ;;  %v406_v46 = vpop.permute.xlu0 %405 }
  0xf3   : > { %v859_v38 = vsel %vm846_vm2, %v842_v33, %v422_v2  ;;  %v851_v53 = vsel %vm846_vm2, %v834_v45, %v406_v46 }
  0xf4   : > { %807 = vrot.lane.b32.xlu1 %v1363_v44, %s1488_s6  ;;  %791 = vrot.lane.b32.xlu0 %v1547_v6, %s1488_s6 }
  0xf6   : > { %v1951_v4 = vpop.permute.xlu1 %611  ;;  %v1953_v54 = vpop.permute.xlu0 %595 }
  0xf7   : > { %v909_v36 = vsel %vm897_vm5, %v1889_v24, %v1951_v4  ;;  %v901_v37 = vsel %vm897_vm5, %v1892_v3, %v1953_v54  ;;  %v2155_v4 = vld [vmem:[#allocation3_spill] sm:$0xff] }
  0xf8   : > { %619 = vrot.lane.b32.xlu1 %v1363_v44, %s1485_s22  ;;  %603 = vrot.lane.b32.xlu0 %v1547_v6, %s1485_s22 }
  0xfa   : > { %v674_v21 = vpop.permute.xlu1 %673  ;;  %v658_v57 = vpop.permute.xlu0 %657 }
  0xfb   : > { %v925_v9 = vsel %vm914_vm6, %v908_v39, %v674_v21  ;;  %v917_v49 = vsel %vm914_vm6, %v900_v41, %v658_v57  ;;  %v2156_v21 = vld [vmem:[#allocation4_spill] sm:$0xff] }
  0xfc   : > { %681 = vrot.lane.b32.xlu1 %v1332_v20, %s1486_s23  ;;  %665 = vrot.lane.b32.xlu0 %v1554_v8, %s1486_s23  ;;  %v1348_v8 = vld [vmem:[%s1523_s17 + $0xd9] sm:$0xff] }
  0xfe   : > { %v424_v13 = vpop.permute.xlu1 %423  ;;  %v408_v0 = vpop.permute.xlu0 %407 }
  0xff   : > { %v860_v6 = vsel %vm846_vm2, %v843_v7, %v424_v13  ;;  %v852_v29 = vsel %vm846_vm2, %v835_v63, %v408_v0 }
 0x100   : > { %683 = vrot.lane.b32.xlu1 %v1333_v58, %s1486_s23  ;;  %667 = vrot.lane.b32.xlu0 %v1564_v10, %s1486_s23  ;;  %v1364_v10 = vld [vmem:[%s1523_s17 + $0xda] sm:$0xff] }
 0x102   : > { %v486_v30 = vpop.permute.xlu1 %485  ;;  %v470_v51 = vpop.permute.xlu0 %469 }
 0x103   : > { %v876_v22 = vsel %vm863_vm3, %v859_v38, %v486_v30  ;;  %v868_v23 = vsel %vm863_vm3, %v851_v53, %v470_v51 }
 0x104   : > { %745 = vrot.lane.b32.xlu1 %v1348_v8, %s1487_s24  ;;  %729 = vrot.lane.b32.xlu0 %v1574_v12, %s1487_s24 }
 0x106   : > { %v676_v47 = vpop.permute.xlu1 %675  ;;  %v660_v25 = vpop.permute.xlu0 %659 }
 0x107   : > { %v926_v44 = vsel %vm914_vm6, %v909_v36, %v676_v47  ;;  %v918_v33 = vsel %vm914_vm6, %v901_v37, %v660_v25 }
 0x108   : > { %747 = vrot.lane.b32.xlu1 %v1349_v52, %s1487_s24  ;;  %731 = vrot.lane.b32.xlu0 %v1584_v14, %s1487_s24 }
 0x10a   : > { %v738_v26 = vpop.permute.xlu1 %737  ;;  %v722_v61 = vpop.permute.xlu0 %721 }
 0x10b   : > { %v942_v50 = vsel %vm931_vm7, %v925_v9, %v738_v26  ;;  %v934_v18 = vsel %vm931_vm7, %v917_v49, %v722_v61 }
 0x10c   : > { %809 = vrot.lane.b32.xlu1 %v1364_v10, %s1488_s6  ;;  %793 = vrot.lane.b32.xlu0 %v1591_v16, %s1488_s6 }
 0x10e   : > { %v488_v11 = vpop.permute.xlu1 %487  ;;  %v472_v17 = vpop.permute.xlu0 %471 }
 0x10f   : > { %v877_v12 = vsel %vm863_vm3, %v860_v6, %v488_v11  ;;  %v869_v19 = vsel %vm863_vm3, %v852_v29, %v472_v17 }
 0x110   : > { %811 = vrot.lane.b32.xlu1 %v1365_v15, %s1488_s6  ;;  %795 = vrot.lane.b32.xlu0 %v2154_v31, %s1488_s6 }
 0x112   : > { %v550_v14 = vpop.permute.xlu1 %549  ;;  %v534_v32 = vpop.permute.xlu0 %533 }
 0x113   : > { %v1993_v59 = vsel %vm880_vm4, %v876_v22, %v550_v14  ;;  %v1996_v60 = vsel %vm880_vm4, %v868_v23, %v534_v32 }
 0x116   : > { %v740_v16 = vpop.permute.xlu1 %739  ;;  %v724_v48 = vpop.permute.xlu0 %723 }
 0x117   : > { %v943_v45 = vsel %vm931_vm7, %v926_v44, %v740_v16  ;;  %v935_v2 = vsel %vm931_vm7, %v918_v33, %v724_v48 }
 0x11a   : > { %v802_v55 = vpop.permute.xlu1 %801  ;;  %v786_v56 = vpop.permute.xlu0 %785 }
 0x11b   : > { %v959_v1 = vsel %vm948_vm8, %v942_v50, %v802_v55  ;;  %v951_v5 = vsel %vm948_vm8, %v934_v18, %v786_v56 }
 0x11c   : > { %1421 = vmatprep.mubr.msk.f32.mxu0 %vm977_vm9, %v951_v5  ;;  %1433 = vmatprep.mubr.msk.f32.mxu1 %vm977_vm9, %v959_v1 }
 0x11e   : > { %v362_v62 = vpop.permute.xlu1 %361  ;;  %v346_v35 = vpop.permute.xlu0 %345 }
 0x11f   : > { %v844_v54 = vsel %vm829_vm1, %v2155_v4, %v362_v62  ;;  %v836_v57 = vsel %vm829_vm1, %v2156_v21, %v346_v35  ;;  %v2157_v21 = vld [vmem:[#allocation5_spill] sm:$0xff] }
 0x122   : > { %v552_v40 = vpop.permute.xlu1 %551  ;;  %v536_v43 = vpop.permute.xlu0 %535 }
 0x123   : > { %v894_v27 = vsel %vm880_vm4, %v877_v12, %v552_v40  ;;  %v886_v42 = vsel %vm880_vm4, %v869_v19, %v536_v43 }
 0x126   : > { %v614_v28 = vpop.permute.xlu1 %613  ;;  %v598_v34 = vpop.permute.xlu0 %597 }
 0x127   : > { %v910_v19 = vsel %vm897_vm5, %v1993_v59, %v614_v28  ;;  %v902_v31 = vsel %vm897_vm5, %v1996_v60, %v598_v34 }
 0x12a   : > { %v804_v46 = vpop.permute.xlu1 %803  ;;  %v788_v38 = vpop.permute.xlu0 %787 }
 0x12b   : > { %v960_v53 = vsel %vm948_vm8, %v943_v45, %v804_v46  ;;  %v952_v20 = vsel %vm948_vm8, %v935_v2, %v788_v38 }
 0x12c   : > { %1422 = vmatmul.mubr.msk.f32.gmra.mrb[2].mxu0 %vm977_vm9, %v952_v20  ;;  %1434 = vmatmul.mubr.msk.f32.gmra.mrb[2].mxu1 %vm977_vm9, %v960_v53 }
 0x12e   : > { %v2028_v24 = vpop.permute.xlu1 %363  ;;  %v2030_v3 = vpop.permute.xlu0 %347 }
 0x132   : > { %v426_v58 = vpop.permute.xlu1 %425  ;;  %v410_v7 = vpop.permute.xlu0 %409 }
 0x133   : > { %v861_v63 = vsel %vm846_vm2, %v844_v54, %v426_v58  ;;  %v853_v13 = vsel %vm846_vm2, %v836_v57, %v410_v7  ;;  %v845_v57 = vsel %vm829_vm1, %v2157_v21, %v2028_v24  ;;  %v2158_v58 = vld [vmem:[#allocation6_spill] sm:$0xff] }
 0x134   : > { %v837_v7 = vsel %vm829_vm1, %v2158_v58, %v2030_v3 }
 0x136   : > { %v616_v0 = vpop.permute.xlu1 %615  ;;  %v600_v6 = vpop.permute.xlu0 %599 }
 0x137   : > { %v911_v55 = vsel %vm897_vm5, %v894_v27, %v616_v0  ;;  %v903_v56 = vsel %vm897_vm5, %v886_v42, %v600_v6 }
 0x13a   : > { %v678_v29 = vpop.permute.xlu1 %677  ;;  %v662_v8 = vpop.permute.xlu0 %661 }
 0x13b   : > { %v927_v14 = vsel %vm914_vm6, %v910_v19, %v678_v29  ;;  %v919_v32 = vsel %vm914_vm6, %v902_v31, %v662_v8 }
 0x13e   : > { %v428_v30 = vpop.permute.xlu1 %427  ;;  %v412_v51 = vpop.permute.xlu0 %411 }
 0x13f   : > { %v854_v6 = vsel %vm846_vm2, %v837_v7, %v412_v51 }
 0x142   : > { %v490_v22 = vpop.permute.xlu1 %489  ;;  %v474_v23 = vpop.permute.xlu0 %473 }
 0x143   : > { %v878_v46 = vsel %vm863_vm3, %v861_v63, %v490_v22  ;;  %v870_v38 = vsel %vm863_vm3, %v853_v13, %v474_v23  ;;  %v862_v13 = vsel %vm846_vm2, %v845_v57, %v428_v30 }
 0x146   : > { %v680_v52 = vpop.permute.xlu1 %679  ;;  %v664_v47 = vpop.permute.xlu0 %663 }
 0x147   : > { %v928_v1 = vsel %vm914_vm6, %v911_v55, %v680_v52  ;;  %v920_v5 = vsel %vm914_vm6, %v903_v56, %v664_v47 }
 0x14a   : > { %v742_v25 = vpop.permute.xlu1 %741  ;;  %v726_v10 = vpop.permute.xlu0 %725 }
 0x14b   : > { %v944_v16 = vsel %vm931_vm7, %v927_v14, %v742_v25  ;;  %v936_v48 = vsel %vm931_vm7, %v919_v32, %v726_v10 }
 0x14e   : > { %v492_v26 = vpop.permute.xlu1 %491  ;;  %v476_v61 = vpop.permute.xlu0 %475 }
 0x14f   : > { %v879_v22 = vsel %vm863_vm3, %v862_v13, %v492_v26  ;;  %v871_v24 = vsel %vm863_vm3, %v854_v6, %v476_v61 }
 0x152   : > { %v554_v15 = vpop.permute.xlu1 %553  ;;  %v538_v11 = vpop.permute.xlu0 %537 }
 0x153   : > { %v895_v4 = vsel %vm880_vm4, %v878_v46, %v554_v15  ;;  %v887_v54 = vsel %vm880_vm4, %v870_v38, %v538_v11 }
 0x156   : > { %v744_v17 = vpop.permute.xlu1 %743  ;;  %v728_v12 = vpop.permute.xlu0 %727 }
 0x157   : > { %v945_v62 = vsel %vm931_vm7, %v928_v1, %v744_v17  ;;  %v937_v35 = vsel %vm931_vm7, %v920_v5, %v728_v12 }
 0x15a   : > { %v806_v39 = vpop.permute.xlu1 %805  ;;  %v790_v41 = vpop.permute.xlu0 %789 }
 0x15b   : > { %v961_v9 = vsel %vm948_vm8, %v944_v16, %v806_v39  ;;  %v953_v49 = vsel %vm948_vm8, %v936_v48, %v790_v41  ;;  %v1366_v16 = vld [vmem:[%s2142_s2] ss:$0 sm:$0xff] }
 0x15c   : > { %1424 = vmatprep.mubr.msk.f32.mxu0 %vm977_vm9, %v953_v49  ;;  %1436 = vmatprep.mubr.msk.f32.mxu1 %vm977_vm9, %v961_v9 }
 0x15e   : > { %v556_v59 = vpop.permute.xlu1 %555  ;;  %v540_v60 = vpop.permute.xlu0 %539 }
 0x15f   : > { %v896_v25 = vsel %vm880_vm4, %v879_v22, %v556_v59  ;;  %v888_v30 = vsel %vm880_vm4, %v871_v24, %v540_v60 }
 0x162   : > { %v618_v50 = vpop.permute.xlu1 %617  ;;  %v602_v18 = vpop.permute.xlu0 %601 }
 0x163   : > { %v912_v0 = vsel %vm897_vm5, %v895_v4, %v618_v50  ;;  %v904_v63 = vsel %vm897_vm5, %v887_v54, %v602_v18 }
 0x166   : > { %v808_v40 = vpop.permute.xlu1 %807  ;;  %v792_v43 = vpop.permute.xlu0 %791 }
 0x167   : > { %v962_v28 = vsel %vm948_vm8, %v945_v62, %v808_v40  ;;  %v954_v34 = vsel %vm948_vm8, %v937_v35, %v792_v43 }
 0x168   : > { %1425 = vmatmul.mubr.msk.f32.gmra.mrb[4].mxu0 %vm977_vm9, %v954_v34  ;;  %1437 = vmatmul.mubr.msk.f32.gmra.mrb[4].mxu1 %vm977_vm9, %v962_v28 }
 0x16a   : > { %v620_v27 = vpop.permute.xlu1 %619  ;;  %v604_v42 = vpop.permute.xlu0 %603 }
 0x16b   : > { %v913_v15 = vsel %vm897_vm5, %v896_v25, %v620_v27  ;;  %v905_v26 = vsel %vm897_vm5, %v888_v30, %v604_v42 }
 0x16e   : > { %v682_v36 = vpop.permute.xlu1 %681  ;;  %v666_v37 = vpop.permute.xlu0 %665 }
 0x16f   : > { %v929_v29 = vsel %vm914_vm6, %v912_v0, %v682_v36  ;;  %v921_v8 = vsel %vm914_vm6, %v904_v63, %v666_v37 }
 0x172   : > { %v684_v44 = vpop.permute.xlu1 %683  ;;  %v668_v33 = vpop.permute.xlu0 %667 }
 0x173   : > { %v930_v61 = vsel %vm914_vm6, %v913_v15, %v684_v44  ;;  %v922_v11 = vsel %vm914_vm6, %v905_v26, %v668_v33 }
 0x176   : > { %v746_v45 = vpop.permute.xlu1 %745  ;;  %v730_v2 = vpop.permute.xlu0 %729 }
 0x177   : > { %v946_v23 = vsel %vm931_vm7, %v929_v29, %v746_v45  ;;  %v938_v3 = vsel %vm931_vm7, %v921_v8, %v730_v2 }
 0x17a   : > { %v748_v53 = vpop.permute.xlu1 %747  ;;  %v732_v20 = vpop.permute.xlu0 %731 }
 0x17b   : > { %v947_v17 = vsel %vm931_vm7, %v930_v61, %v748_v53  ;;  %v939_v12 = vsel %vm931_vm7, %v922_v11, %v732_v20 }
 0x17e   : > { %v810_v52 = vpop.permute.xlu1 %809  ;;  %v794_v47 = vpop.permute.xlu0 %793 }
 0x17f   : > { %v963_v51 = vsel %vm948_vm8, %v946_v23, %v810_v52  ;;  %v955_v10 = vsel %vm948_vm8, %v938_v3, %v794_v47 }
 0x180   : > { %1427 = vmatprep.mubr.msk.f32.mxu0 %vm977_vm9, %v955_v10  ;;  %1439 = vmatprep.mubr.msk.f32.mxu1 %vm977_vm9, %v963_v51 }
 0x182   : > { %v812_v19 = vpop.permute.xlu1 %811  ;;  %v796_v31 = vpop.permute.xlu0 %795 }
 0x183   : > { %v964_v14 = vsel %vm948_vm8, %v947_v17, %v812_v19  ;;  %v956_v32 = vsel %vm948_vm8, %v939_v12, %v796_v31 }
 0x184   : > { %1428 = vmatmul.mubr.msk.f32.gmra.mrb[6].mxu0 %vm977_vm9, %v956_v32  ;;  %1440 = vmatmul.mubr.msk.f32.gmra.mrb[6].mxu1 %vm977_vm9, %v964_v14 }
 0x1c0   : > { %v1420_v48 = vpop.f32.mrb[0].mxu0  ;;  %v1432_v39 = vpop.f32.mrb[0].mxu1 }
 0x1c1   : > { %v1102_v41 = vadd.f32 %v1420_v48, %v1366_v16  ;;  %v1142_v9 = vadd.f32 %v1432_v39, %v1366_v16  ;;  %v1096_v49 = vpop.f32.mrb[1].mxu0  ;;  %v1136_v59 = vpop.f32.mrb[1].mxu1 }
 0x1c2   : > { %v1097_v60 = vadd.f32 %v1366_v16, %v1096_v49  ;;  %v1137_v50 = vadd.f32 %v1366_v16, %v1136_v59 }
 0x1c3   : > { %v1176_v18 = vmax.f32 %v1102_v41, 0.0  ;;  %v1184_v55 = vmax.f32 %v1142_v9, 0.0 }
 0x1c4   : > { %v1175_v56 = vmax.f32 %v1097_v60, 0.0  ;;  %v1183_v1 = vmax.f32 %v1137_v50, 0.0 }
 0x1c5   : > { %1192 = vst.msk [vmem:[%s2103_s16 + $0x8] sm:$0xff] %vm829_vm1, %v1176_v18  ;;  %1200 = vst.msk [vmem:[%s2103_s16 + $0x48] sm:$0xff] %vm829_vm1, %v1184_v55 }
 0x1c6   : > { %1191 = vst.msk [vmem:[%s2103_s16] sm:$0xff] %vm829_vm1, %v1175_v56  ;;  %1199 = vst.msk [vmem:[%s2103_s16 + $0x40] sm:$0xff] %vm829_vm1, %v1183_v1 }
 0x1ff   : > { %v1423_v5 = vpop.f32.mrb[2].mxu0  ;;  %v1435_v62 = vpop.f32.mrb[2].mxu1 }
 0x200   : > { %v1112_v35 = vadd.f32 %v1423_v5, %v1366_v16  ;;  %v1152_v40 = vadd.f32 %v1435_v62, %v1366_v16  ;;  %v1106_v43 = vpop.f32.mrb[3].mxu0  ;;  %v1146_v28 = vpop.f32.mrb[3].mxu1 }
 0x201   : > { %v1107_v34 = vadd.f32 %v1366_v16, %v1106_v43  ;;  %v1147_v27 = vadd.f32 %v1366_v16, %v1146_v28 }
 0x202   : > { %v1178_v42 = vmax.f32 %v1112_v35, 0.0  ;;  %v1186_v36 = vmax.f32 %v1152_v40, 0.0 }
 0x203   : > { %v1177_v37 = vmax.f32 %v1107_v34, 0.0  ;;  %v1185_v44 = vmax.f32 %v1147_v27, 0.0 }
 0x204   : > { %1194 = vst.msk [vmem:[%s2103_s16 + $0x18] sm:$0xff] %vm829_vm1, %v1178_v42  ;;  %1202 = vst.msk [vmem:[%s2103_s16 + $0x58] sm:$0xff] %vm829_vm1, %v1186_v36 }
 0x205   : > { %1193 = vst.msk [vmem:[%s2103_s16 + $0x10] sm:$0xff] %vm829_vm1, %v1177_v37  ;;  %1201 = vst.msk [vmem:[%s2103_s16 + $0x50] sm:$0xff] %vm829_vm1, %v1185_v44 }
 0x23b   : > { %v1426_v33 = vpop.f32.mrb[4].mxu0  ;;  %v1438_v45 = vpop.f32.mrb[4].mxu1 }
 0x23c   : > { %v1122_v2 = vadd.f32 %v1426_v33, %v1366_v16  ;;  %v1162_v46 = vadd.f32 %v1438_v45, %v1366_v16  ;;  %v1116_v38 = vpop.f32.mrb[5].mxu0  ;;  %v1156_v53 = vpop.f32.mrb[5].mxu1 }
 0x23d   : > { %v1117_v20 = vadd.f32 %v1366_v16, %v1116_v38  ;;  %v1157_v4 = vadd.f32 %v1366_v16, %v1156_v53 }
 0x23e   : > { %v1180_v54 = vmax.f32 %v1122_v2, 0.0  ;;  %v1188_v21 = vmax.f32 %v1162_v46, 0.0 }
 0x23f   : > { %v1179_v57 = vmax.f32 %v1117_v20, 0.0  ;;  %v1187_v58 = vmax.f32 %v1157_v4, 0.0 }
 0x240   : > { %1196 = vst.msk [vmem:[%s2103_s16 + $0x28] sm:$0xff] %vm829_vm1, %v1180_v54  ;;  %1204 = vst.msk [vmem:[%s2103_s16 + $0x68] sm:$0xff] %vm829_vm1, %v1188_v21 }
 0x241   : > { %1195 = vst.msk [vmem:[%s2103_s16 + $0x20] sm:$0xff] %vm829_vm1, %v1179_v57  ;;  %1203 = vst.msk [vmem:[%s2103_s16 + $0x60] sm:$0xff] %vm829_vm1, %v1187_v58 }
 0x257   : > { %v1429_v7 = vpop.f32.mrb[6].mxu0  ;;  %v1441_v0 = vpop.f32.mrb[6].mxu1 }
 0x258   : > { %v1132_v63 = vadd.f32 %v1429_v7, %v1366_v16  ;;  %v1172_v13 = vadd.f32 %v1441_v0, %v1366_v16  ;;  %v1126_v6 = vpop.f32.mrb[7].mxu0  ;;  %v1166_v29 = vpop.f32.mrb[7].mxu1 }
 0x259   : > { %v1127_v8 = vadd.f32 %v1366_v16, %v1126_v6  ;;  %v1167_v22 = vadd.f32 %v1366_v16, %v1166_v29 }
 0x25a   : > { %v1182_v24 = vmax.f32 %v1132_v63, 0.0  ;;  %v1190_v23 = vmax.f32 %v1172_v13, 0.0 }
 0x25b   : > { %v1181_v3 = vmax.f32 %v1127_v8, 0.0  ;;  %v1189_v52 = vmax.f32 %v1167_v22, 0.0 }
 0x25c   : > { %1198 = vst.msk [vmem:[%s2103_s16 + $0x38] sm:$0xff] %vm829_vm1, %v1182_v24  ;;  %1206 = vst.msk [vmem:[%s2103_s16 + $0x78] sm:$0xff] %vm829_vm1, %v1190_v23 }
 0x25d   : > { %1197 = vst.msk [vmem:[%s2103_s16 + $0x30] sm:$0xff] %vm829_vm1, %v1181_v3  ;;  %1205 = vst.msk [vmem:[%s2103_s16 + $0x70] sm:$0xff] %vm829_vm1, %v1189_v52 }
 0x25e PF: > { %s13_s12 = sadd.s32 1, %s1479_s12  }
 0x25f   : > { %p10_p4 = scmp.ge.s32.totalorder %s13_s12, 6  }
 0x261   :  { %12 = sbr.rel (!%p10_p4) target bundleno = 1 (0x1), region = 64 }

</bundles_post_ra>
